<compile_context>
chip_gen: v6e
topology: v6e:2x2x1
jax: 0.10.0
libtpu: 0.0.40
codegen_flags: <defaults>
</compile_context>

<pallas_src>
import functools

import jax
import jax.numpy as jnp
from jax.experimental import pallas as pl
from jax.experimental.pallas import tpu as pltpu


def _char_lstm_kernel(emb_ref, h0_ref, c0_ref,
                      wx_ref, wh_ref, b_ref,
                      wy_ref, by_ref,
                      out_ref, h_out_ref, c_out_ref,
                      h_hist_ref):
    """Full recurrent loop over the sequence inside one kernel call.

    Gate packing order along the 4H lane axis is [forget, input, output, cell]:
    sigmoid is applied to the first 3H lanes, tanh to the last H lanes.
    """
    T = emb_ref.shape[0]
    H = h0_ref.shape[1]

    # Hoist all weight / input loads out of the recurrent loop (stay in vregs).
    emb = emb_ref[...]                       # (T, E)
    wx = wx_ref[...]                         # (E, 4H)
    wh = wh_ref[...]                         # (H, 4H)
    b = b_ref[...]                           # (1, 4H)

    lane = jax.lax.broadcasted_iota(jnp.int32, (1, 4 * H), dimension=1)
    sig_mask = lane < 3 * H                  # sigmoid lanes (f, i, o); tanh tail (c)

    h = h0_ref[...]                          # (1, H) carried in registers
    c = c0_ref[...]                          # (1, H)

    # T is a static shape -> fully unrolled loop; keeps h/c in vregs and gives
    # the scheduler visibility across steps.
    for t in range(T):
        x = emb[t:t + 1, :]                  # (1, E) static sublane slice

        gates = (jnp.dot(x, wx, preferred_element_type=jnp.float32)
                 + jnp.dot(h, wh, preferred_element_type=jnp.float32)
                 + b)                        # (1, 4H) -- full lane width

        act = jnp.where(sig_mask, jax.nn.sigmoid(gates), jnp.tanh(gates))

        ft = act[:, 0:H]
        it = act[:, H:2 * H]
        ot = act[:, 2 * H:3 * H]
        ct = act[:, 3 * H:4 * H]

        c = ft * c + it * ct
        h = ot * jnp.tanh(c)

        # Off-critical-path store of h_t for the batched output projection.
        h_hist_ref[pl.ds(t, 1), :] = h

    # One (T, H) @ (H, C) matmul + one dense block store (FC hoisted out of loop).
    h_hist = h_hist_ref[...]
    out_ref[...] = (jnp.dot(h_hist, wy_ref[...], preferred_element_type=jnp.float32)
                    + by_ref[...])

    h_out_ref[...] = h
    c_out_ref[...] = c


def init_char_lstm_params(key, n_chars, embedding_size, hidden_size):
    """Deterministic synthetic parameter init (shapes match the nn.Module)."""
    ks = jax.random.split(key, 11)
    E, H, C = embedding_size, hidden_size, n_chars
    in_dim = E + H

    def lin(kw, kb, fan_in, fan_out):
        bound = 1.0 / jnp.sqrt(jnp.float32(fan_in))
        w = jax.random.uniform(kw, (fan_in, fan_out), jnp.float32, -bound, bound)
        b = jax.random.uniform(kb, (1, fan_out), jnp.float32, -bound, bound)
        return w, b

    params = {}
    params["embedding"] = jax.random.normal(ks[0], (C, E), jnp.float32)
    params["forget"] = lin(ks[1], ks[2], in_dim, H)
    params["input"] = lin(ks[3], ks[4], in_dim, H)
    params["output"] = lin(ks[5], ks[6], in_dim, H)
    params["cell"] = lin(ks[7], ks[8], in_dim, H)
    params["fc_out"] = lin(ks[9], ks[10], H, C)
    return params


@functools.partial(jax.jit, static_argnames=())
def char_lstm_forward(params, input_seq, hidden=None, cell=None):
    """Mirrors CharLSTM.forward: returns (out_seq, hidden_last, cell_last)."""
    emb_table = params["embedding"]
    C, E = emb_table.shape
    H = params["forget"][0].shape[1]
    T = input_seq.shape[0]

    # Glue: embedding gather stays in plain JAX.
    emb = jnp.take(emb_table, input_seq, axis=0).astype(jnp.float32)   # (T, E)

    h0 = (jnp.zeros((1, H), jnp.float32) if hidden is None
          else hidden.reshape(1, H).astype(jnp.float32))
    c0 = (jnp.zeros((1, H), jnp.float32) if cell is None
          else cell.reshape(1, H).astype(jnp.float32))

    def split_gate(name):
        w, b = params[name]
        return w[:E, :], w[E:, :], b          # (E,H), (H,H), (1,H)

    wfx, wfh, bf = split_gate("forget")
    wix, wih, bi = split_gate("input")
    wox, woh, bo = split_gate("output")
    wcx, wch, bc = split_gate("cell")

    # Pack gates along the output (lane) axis in order [f, i, o, c]:
    # sigmoid gates first, tanh (cell candidate) last.
    wx_all = jnp.concatenate([wfx, wix, wox, wcx], axis=1)   # (E, 4H)
    wh_all = jnp.concatenate([wfh, wih, woh, wch], axis=1)   # (H, 4H)
    b_all = jnp.concatenate([bf, bi, bo, bc], axis=1)        # (1, 4H)

    wy, by = params["fc_out"]                 # (H, C), (1, C)

    vmem = pl.BlockSpec(memory_space=pltpu.MemorySpace.VMEM)
    n_inputs = 8

    out_seq, h_last, c_last = pl.pallas_call(
        _char_lstm_kernel,
        out_shape=(
            jax.ShapeDtypeStruct((T, C), jnp.float32),
            jax.ShapeDtypeStruct((1, H), jnp.float32),
            jax.ShapeDtypeStruct((1, H), jnp.float32),
        ),
        in_specs=[vmem] * n_inputs,
        out_specs=(vmem, vmem, vmem),
        scratch_shapes=[pltpu.VMEM((T, H), jnp.float32)],
    )(emb, h0, c0, wx_all, wh_all, b_all, wy, by)

    return out_seq, h_last[0], c_last[0]


def char_lstm_forward_ref(params, input_seq):
    """Pure-JAX reference for correctness checking."""
    emb_table = params["embedding"]
    H = params["forget"][0].shape[1]
    emb = jnp.take(emb_table, input_seq, axis=0)

    def step(carry, x):
        h, c = carry
        hx = jnp.concatenate([x, h], axis=0)
        ft = jax.nn.sigmoid(hx @ params["forget"][0] + params["forget"][1][0])
        it = jax.nn.sigmoid(hx @ params["input"][0] + params["input"][1][0])
        ct = jnp.tanh(hx @ params["cell"][0] + params["cell"][1][0])
        c_new = ft * c + it * ct
        ot = jax.nn.sigmoid(hx @ params["output"][0] + params["output"][1][0])
        h_new = ot * jnp.tanh(c_new)
        y = h_new @ params["fc_out"][0] + params["fc_out"][1][0]
        return (h_new, c_new), y

    (h, c), ys = jax.lax.scan(step, (jnp.zeros(H), jnp.zeros(H)), emb)
    return ys, h, c


if __name__ == "__main__":
    n_chars, embedding_size, hidden_size = 64, 32, 32
    seq_len = 8

    key = jax.random.PRNGKey(0)
    k_params, k_seq = jax.random.split(key)
    params = init_char_lstm_params(k_params, n_chars, embedding_size, hidden_size)
    input_seq = jax.random.randint(k_seq, (seq_len,), 0, n_chars, dtype=jnp.int32)

    out_seq, h_last, c_last = char_lstm_forward(params, input_seq)
    jax.block_until_ready((out_seq, h_last, c_last))

    ref_out, ref_h, ref_c = char_lstm_forward_ref(params, input_seq)
    assert out_seq.shape == (seq_len, n_chars)
    assert h_last.shape == (hidden_size,)
    assert c_last.shape == (hidden_size,)
    assert jnp.allclose(out_seq, ref_out, atol=1e-5)
    assert jnp.allclose(h_last, ref_h, atol=1e-5)
    assert jnp.allclose(c_last, ref_c, atol=1e-5)

    print("KERNEL_OK")
</pallas_src>

<mosaic_0001>
module attributes {stable_mosaic.version = 11 : i64} {
  func.func @_char_lstm_kernel(%arg0: memref<8x32xf32, #tpu.memory_space<vmem>>, %arg1: memref<1x32xf32, #tpu.memory_space<vmem>>, %arg2: memref<1x32xf32, #tpu.memory_space<vmem>>, %arg3: memref<32x128xf32, #tpu.memory_space<vmem>>, %arg4: memref<32x128xf32, #tpu.memory_space<vmem>>, %arg5: memref<1x128xf32, #tpu.memory_space<vmem>>, %arg6: memref<32x64xf32, #tpu.memory_space<vmem>>, %arg7: memref<1x64xf32, #tpu.memory_space<vmem>>, %arg8: memref<8x64xf32, #tpu.memory_space<vmem>>, %arg9: memref<1x32xf32, #tpu.memory_space<vmem>>, %arg10: memref<1x32xf32, #tpu.memory_space<vmem>>, %arg11: memref<8x32xf32, #tpu.memory_space<vmem>>) attributes {dimension_semantics = [], scalar_prefetch = 0 : i64, scratch_operands = 1 : i64, tpu.core_type = #tpu.core_type<tc>} {
    %c0 = arith.constant 0 : index
    %c0_0 = arith.constant 0 : index
    %0 = vector.load %arg0[%c0, %c0_0] : memref<8x32xf32, #tpu.memory_space<vmem>>, vector<8x32xf32>
    %c0_1 = arith.constant 0 : index
    %c0_2 = arith.constant 0 : index
    %1 = vector.load %arg3[%c0_1, %c0_2] : memref<32x128xf32, #tpu.memory_space<vmem>>, vector<32x128xf32>
    %c0_3 = arith.constant 0 : index
    %c0_4 = arith.constant 0 : index
    %2 = vector.load %arg4[%c0_3, %c0_4] : memref<32x128xf32, #tpu.memory_space<vmem>>, vector<32x128xf32>
    %c0_5 = arith.constant 0 : index
    %c0_6 = arith.constant 0 : index
    %3 = vector.load %arg5[%c0_5, %c0_6] : memref<1x128xf32, #tpu.memory_space<vmem>>, vector<1x128xf32>
    %4 = tpu.iota {dimensions = array<i32: 1>} : vector<1x128xi32>
    %c96_i32 = arith.constant 96 : i32
    %5 = vector.broadcast %c96_i32 : i32 to vector<1x128xi32>
    %6 = arith.cmpi slt, %4, %5 : vector<1x128xi32>
    %c0_7 = arith.constant 0 : index
    %c0_8 = arith.constant 0 : index
    %7 = vector.load %arg1[%c0_7, %c0_8] : memref<1x32xf32, #tpu.memory_space<vmem>>, vector<1x32xf32>
    %c0_9 = arith.constant 0 : index
    %c0_10 = arith.constant 0 : index
    %8 = vector.load %arg2[%c0_9, %c0_10] : memref<1x32xf32, #tpu.memory_space<vmem>>, vector<1x32xf32>
    %9 = vector.extract_strided_slice %0 {offsets = [0, 0], sizes = [1, 32], strides = [1, 1]} : vector<8x32xf32> to vector<1x32xf32>
    %cst = arith.constant dense<0.000000e+00> : vector<1x128xf32>
    %10 = tpu.matmul %9, %1, %cst {dimension_numbers = #tpu.dot_dimension_numbers<[1], [0], [0], [1], [0, 0, 1, 1], [], []>} : vector<1x32xf32>, vector<32x128xf32>, vector<1x128xf32> -> vector<1x128xf32>
    %cst_11 = arith.constant dense<0.000000e+00> : vector<1x128xf32>
    %11 = tpu.matmul %7, %2, %cst_11 {dimension_numbers = #tpu.dot_dimension_numbers<[1], [0], [0], [1], [0, 0, 1, 1], [], []>} : vector<1x32xf32>, vector<32x128xf32>, vector<1x128xf32> -> vector<1x128xf32>
    %12 = arith.addf %10, %11 : vector<1x128xf32>
    %13 = arith.addf %12, %3 : vector<1x128xf32>
    %14 = arith.negf %13 : vector<1x128xf32>
    %15 = math.exp %14 : vector<1x128xf32>
    %cst_12 = arith.constant 1.000000e+00 : f32
    %16 = vector.broadcast %cst_12 : f32 to vector<1x128xf32>
    %17 = arith.addf %16, %15 : vector<1x128xf32>
    %18 = arith.divf %16, %17 : vector<1x128xf32>
    %19 = math.tanh %13 : vector<1x128xf32>
    %20 = arith.select %6, %18, %19 : vector<1x128xi1>, vector<1x128xf32>
    %21 = vector.extract_strided_slice %20 {offsets = [0, 0], sizes = [1, 32], strides = [1, 1]} : vector<1x128xf32> to vector<1x32xf32>
    %22 = vector.extract_strided_slice %20 {offsets = [0, 32], sizes = [1, 32], strides = [1, 1]} : vector<1x128xf32> to vector<1x32xf32>
    %23 = vector.extract_strided_slice %20 {offsets = [0, 64], sizes = [1, 32], strides = [1, 1]} : vector<1x128xf32> to vector<1x32xf32>
    %24 = vector.extract_strided_slice %20 {offsets = [0, 96], sizes = [1, 32], strides = [1, 1]} : vector<1x128xf32> to vector<1x32xf32>
    %25 = arith.mulf %21, %8 : vector<1x32xf32>
    %26 = arith.mulf %22, %24 : vector<1x32xf32>
    %27 = arith.addf %25, %26 : vector<1x32xf32>
    %28 = math.tanh %27 : vector<1x32xf32>
    %29 = arith.mulf %23, %28 : vector<1x32xf32>
    %c0_13 = arith.constant 0 : index
    %c0_14 = arith.constant 0 : index
    %30 = vector.load %arg11[%c0_13, %c0_14] : memref<8x32xf32, #tpu.memory_space<vmem>>, vector<1x32xf32>
    tpu.vector_store %arg11[%c0_13, %c0_14], %29 {strides = array<i32>} : memref<8x32xf32, #tpu.memory_space<vmem>>, vector<1x32xf32>,
    %31 = vector.extract_strided_slice %0 {offsets = [1, 0], sizes = [1, 32], strides = [1, 1]} : vector<8x32xf32> to vector<1x32xf32>
    %cst_15 = arith.constant dense<0.000000e+00> : vector<1x128xf32>
    %32 = tpu.matmul %31, %1, %cst_15 {dimension_numbers = #tpu.dot_dimension_numbers<[1], [0], [0], [1], [0, 0, 1, 1], [], []>} : vector<1x32xf32>, vector<32x128xf32>, vector<1x128xf32> -> vector<1x128xf32>
    %cst_16 = arith.constant dense<0.000000e+00> : vector<1x128xf32>
    %33 = tpu.matmul %29, %2, %cst_16 {dimension_numbers = #tpu.dot_dimension_numbers<[1], [0], [0], [1], [0, 0, 1, 1], [], []>} : vector<1x32xf32>, vector<32x128xf32>, vector<1x128xf32> -> vector<1x128xf32>
    %34 = arith.addf %32, %33 : vector<1x128xf32>
    %35 = arith.addf %34, %3 : vector<1x128xf32>
    %36 = arith.negf %35 : vector<1x128xf32>
    %37 = math.exp %36 : vector<1x128xf32>
    %cst_17 = arith.constant 1.000000e+00 : f32
    %38 = vector.broadcast %cst_17 : f32 to vector<1x128xf32>
    %39 = arith.addf %38, %37 : vector<1x128xf32>
    %40 = arith.divf %38, %39 : vector<1x128xf32>
    %41 = math.tanh %35 : vector<1x128xf32>
    %42 = arith.select %6, %40, %41 : vector<1x128xi1>, vector<1x128xf32>
    %43 = vector.extract_strided_slice %42 {offsets = [0, 0], sizes = [1, 32], strides = [1, 1]} : vector<1x128xf32> to vector<1x32xf32>
    %44 = vector.extract_strided_slice %42 {offsets = [0, 32], sizes = [1, 32], strides = [1, 1]} : vector<1x128xf32> to vector<1x32xf32>
    %45 = vector.extract_strided_slice %42 {offsets = [0, 64], sizes = [1, 32], strides = [1, 1]} : vector<1x128xf32> to vector<1x32xf32>
    %46 = vector.extract_strided_slice %42 {offsets = [0, 96], sizes = [1, 32], strides = [1, 1]} : vector<1x128xf32> to vector<1x32xf32>
    %47 = arith.mulf %43, %27 : vector<1x32xf32>
    %48 = arith.mulf %44, %46 : vector<1x32xf32>
    %49 = arith.addf %47, %48 : vector<1x32xf32>
    %50 = math.tanh %49 : vector<1x32xf32>
    %51 = arith.mulf %45, %50 : vector<1x32xf32>
    %c1 = arith.constant 1 : index
    %c0_18 = arith.constant 0 : index
    %52 = vector.load %arg11[%c1, %c0_18] : memref<8x32xf32, #tpu.memory_space<vmem>>, vector<1x32xf32>
    tpu.vector_store %arg11[%c1, %c0_18], %51 {strides = array<i32>} : memref<8x32xf32, #tpu.memory_space<vmem>>, vector<1x32xf32>,
    %53 = vector.extract_strided_slice %0 {offsets = [2, 0], sizes = [1, 32], strides = [1, 1]} : vector<8x32xf32> to vector<1x32xf32>
    %cst_19 = arith.constant dense<0.000000e+00> : vector<1x128xf32>
    %54 = tpu.matmul %53, %1, %cst_19 {dimension_numbers = #tpu.dot_dimension_numbers<[1], [0], [0], [1], [0, 0, 1, 1], [], []>} : vector<1x32xf32>, vector<32x128xf32>, vector<1x128xf32> -> vector<1x128xf32>
    %cst_20 = arith.constant dense<0.000000e+00> : vector<1x128xf32>
    %55 = tpu.matmul %51, %2, %cst_20 {dimension_numbers = #tpu.dot_dimension_numbers<[1], [0], [0], [1], [0, 0, 1, 1], [], []>} : vector<1x32xf32>, vector<32x128xf32>, vector<1x128xf32> -> vector<1x128xf32>
    %56 = arith.addf %54, %55 : vector<1x128xf32>
    %57 = arith.addf %56, %3 : vector<1x128xf32>
    %58 = arith.negf %57 : vector<1x128xf32>
    %59 = math.exp %58 : vector<1x128xf32>
    %cst_21 = arith.constant 1.000000e+00 : f32
    %60 = vector.broadcast %cst_21 : f32 to vector<1x128xf32>
    %61 = arith.addf %60, %59 : vector<1x128xf32>
    %62 = arith.divf %60, %61 : vector<1x128xf32>
    %63 = math.tanh %57 : vector<1x128xf32>
    %64 = arith.select %6, %62, %63 : vector<1x128xi1>, vector<1x128xf32>
    %65 = vector.extract_strided_slice %64 {offsets = [0, 0], sizes = [1, 32], strides = [1, 1]} : vector<1x128xf32> to vector<1x32xf32>
    %66 = vector.extract_strided_slice %64 {offsets = [0, 32], sizes = [1, 32], strides = [1, 1]} : vector<1x128xf32> to vector<1x32xf32>
    %67 = vector.extract_strided_slice %64 {offsets = [0, 64], sizes = [1, 32], strides = [1, 1]} : vector<1x128xf32> to vector<1x32xf32>
    %68 = vector.extract_strided_slice %64 {offsets = [0, 96], sizes = [1, 32], strides = [1, 1]} : vector<1x128xf32> to vector<1x32xf32>
    %69 = arith.mulf %65, %49 : vector<1x32xf32>
    %70 = arith.mulf %66, %68 : vector<1x32xf32>
    %71 = arith.addf %69, %70 : vector<1x32xf32>
    %72 = math.tanh %71 : vector<1x32xf32>
    %73 = arith.mulf %67, %72 : vector<1x32xf32>
    %c2 = arith.constant 2 : index
    %c0_22 = arith.constant 0 : index
    %74 = vector.load %arg11[%c2, %c0_22] : memref<8x32xf32, #tpu.memory_space<vmem>>, vector<1x32xf32>
    tpu.vector_store %arg11[%c2, %c0_22], %73 {strides = array<i32>} : memref<8x32xf32, #tpu.memory_space<vmem>>, vector<1x32xf32>,
    %75 = vector.extract_strided_slice %0 {offsets = [3, 0], sizes = [1, 32], strides = [1, 1]} : vector<8x32xf32> to vector<1x32xf32>
    %cst_23 = arith.constant dense<0.000000e+00> : vector<1x128xf32>
    %76 = tpu.matmul %75, %1, %cst_23 {dimension_numbers = #tpu.dot_dimension_numbers<[1], [0], [0], [1], [0, 0, 1, 1], [], []>} : vector<1x32xf32>, vector<32x128xf32>, vector<1x128xf32> -> vector<1x128xf32>
    %cst_24 = arith.constant dense<0.000000e+00> : vector<1x128xf32>
    %77 = tpu.matmul %73, %2, %cst_24 {dimension_numbers = #tpu.dot_dimension_numbers<[1], [0], [0], [1], [0, 0, 1, 1], [], []>} : vector<1x32xf32>, vector<32x128xf32>, vector<1x128xf32> -> vector<1x128xf32>
    %78 = arith.addf %76, %77 : vector<1x128xf32>
    %79 = arith.addf %78, %3 : vector<1x128xf32>
    %80 = arith.negf %79 : vector<1x128xf32>
    %81 = math.exp %80 : vector<1x128xf32>
    %cst_25 = arith.constant 1.000000e+00 : f32
    %82 = vector.broadcast %cst_25 : f32 to vector<1x128xf32>
    %83 = arith.addf %82, %81 : vector<1x128xf32>
    %84 = arith.divf %82, %83 : vector<1x128xf32>
    %85 = math.tanh %79 : vector<1x128xf32>
    %86 = arith.select %6, %84, %85 : vector<1x128xi1>, vector<1x128xf32>
    %87 = vector.extract_strided_slice %86 {offsets = [0, 0], sizes = [1, 32], strides = [1, 1]} : vector<1x128xf32> to vector<1x32xf32>
    %88 = vector.extract_strided_slice %86 {offsets = [0, 32], sizes = [1, 32], strides = [1, 1]} : vector<1x128xf32> to vector<1x32xf32>
    %89 = vector.extract_strided_slice %86 {offsets = [0, 64], sizes = [1, 32], strides = [1, 1]} : vector<1x128xf32> to vector<1x32xf32>
    %90 = vector.extract_strided_slice %86 {offsets = [0, 96], sizes = [1, 32], strides = [1, 1]} : vector<1x128xf32> to vector<1x32xf32>
    %91 = arith.mulf %87, %71 : vector<1x32xf32>
    %92 = arith.mulf %88, %90 : vector<1x32xf32>
    %93 = arith.addf %91, %92 : vector<1x32xf32>
    %94 = math.tanh %93 : vector<1x32xf32>
    %95 = arith.mulf %89, %94 : vector<1x32xf32>
    %c3 = arith.constant 3 : index
    %c0_26 = arith.constant 0 : index
    %96 = vector.load %arg11[%c3, %c0_26] : memref<8x32xf32, #tpu.memory_space<vmem>>, vector<1x32xf32>
    tpu.vector_store %arg11[%c3, %c0_26], %95 {strides = array<i32>} : memref<8x32xf32, #tpu.memory_space<vmem>>, vector<1x32xf32>,
    %97 = vector.extract_strided_slice %0 {offsets = [4, 0], sizes = [1, 32], strides = [1, 1]} : vector<8x32xf32> to vector<1x32xf32>
    %cst_27 = arith.constant dense<0.000000e+00> : vector<1x128xf32>
    %98 = tpu.matmul %97, %1, %cst_27 {dimension_numbers = #tpu.dot_dimension_numbers<[1], [0], [0], [1], [0, 0, 1, 1], [], []>} : vector<1x32xf32>, vector<32x128xf32>, vector<1x128xf32> -> vector<1x128xf32>
    %cst_28 = arith.constant dense<0.000000e+00> : vector<1x128xf32>
    %99 = tpu.matmul %95, %2, %cst_28 {dimension_numbers = #tpu.dot_dimension_numbers<[1], [0], [0], [1], [0, 0, 1, 1], [], []>} : vector<1x32xf32>, vector<32x128xf32>, vector<1x128xf32> -> vector<1x128xf32>
    %100 = arith.addf %98, %99 : vector<1x128xf32>
    %101 = arith.addf %100, %3 : vector<1x128xf32>
    %102 = arith.negf %101 : vector<1x128xf32>
    %103 = math.exp %102 : vector<1x128xf32>
    %cst_29 = arith.constant 1.000000e+00 : f32
    %104 = vector.broadcast %cst_29 : f32 to vector<1x128xf32>
    %105 = arith.addf %104, %103 : vector<1x128xf32>
    %106 = arith.divf %104, %105 : vector<1x128xf32>
    %107 = math.tanh %101 : vector<1x128xf32>
    %108 = arith.select %6, %106, %107 : vector<1x128xi1>, vector<1x128xf32>
    %109 = vector.extract_strided_slice %108 {offsets = [0, 0], sizes = [1, 32], strides = [1, 1]} : vector<1x128xf32> to vector<1x32xf32>
    %110 = vector.extract_strided_slice %108 {offsets = [0, 32], sizes = [1, 32], strides = [1, 1]} : vector<1x128xf32> to vector<1x32xf32>
    %111 = vector.extract_strided_slice %108 {offsets = [0, 64], sizes = [1, 32], strides = [1, 1]} : vector<1x128xf32> to vector<1x32xf32>
    %112 = vector.extract_strided_slice %108 {offsets = [0, 96], sizes = [1, 32], strides = [1, 1]} : vector<1x128xf32> to vector<1x32xf32>
    %113 = arith.mulf %109, %93 : vector<1x32xf32>
    %114 = arith.mulf %110, %112 : vector<1x32xf32>
    %115 = arith.addf %113, %114 : vector<1x32xf32>
    %116 = math.tanh %115 : vector<1x32xf32>
    %117 = arith.mulf %111, %116 : vector<1x32xf32>
    %c4 = arith.constant 4 : index
    %c0_30 = arith.constant 0 : index
    %118 = vector.load %arg11[%c4, %c0_30] : memref<8x32xf32, #tpu.memory_space<vmem>>, vector<1x32xf32>
    tpu.vector_store %arg11[%c4, %c0_30], %117 {strides = array<i32>} : memref<8x32xf32, #tpu.memory_space<vmem>>, vector<1x32xf32>,
    %119 = vector.extract_strided_slice %0 {offsets = [5, 0], sizes = [1, 32], strides = [1, 1]} : vector<8x32xf32> to vector<1x32xf32>
    %cst_31 = arith.constant dense<0.000000e+00> : vector<1x128xf32>
    %120 = tpu.matmul %119, %1, %cst_31 {dimension_numbers = #tpu.dot_dimension_numbers<[1], [0], [0], [1], [0, 0, 1, 1], [], []>} : vector<1x32xf32>, vector<32x128xf32>, vector<1x128xf32> -> vector<1x128xf32>
    %cst_32 = arith.constant dense<0.000000e+00> : vector<1x128xf32>
    %121 = tpu.matmul %117, %2, %cst_32 {dimension_numbers = #tpu.dot_dimension_numbers<[1], [0], [0], [1], [0, 0, 1, 1], [], []>} : vector<1x32xf32>, vector<32x128xf32>, vector<1x128xf32> -> vector<1x128xf32>
    %122 = arith.addf %120, %121 : vector<1x128xf32>
    %123 = arith.addf %122, %3 : vector<1x128xf32>
    %124 = arith.negf %123 : vector<1x128xf32>
    %125 = math.exp %124 : vector<1x128xf32>
    %cst_33 = arith.constant 1.000000e+00 : f32
    %126 = vector.broadcast %cst_33 : f32 to vector<1x128xf32>
    %127 = arith.addf %126, %125 : vector<1x128xf32>
    %128 = arith.divf %126, %127 : vector<1x128xf32>
    %129 = math.tanh %123 : vector<1x128xf32>
    %130 = arith.select %6, %128, %129 : vector<1x128xi1>, vector<1x128xf32>
    %131 = vector.extract_strided_slice %130 {offsets = [0, 0], sizes = [1, 32], strides = [1, 1]} : vector<1x128xf32> to vector<1x32xf32>
    %132 = vector.extract_strided_slice %130 {offsets = [0, 32], sizes = [1, 32], strides = [1, 1]} : vector<1x128xf32> to vector<1x32xf32>
    %133 = vector.extract_strided_slice %130 {offsets = [0, 64], sizes = [1, 32], strides = [1, 1]} : vector<1x128xf32> to vector<1x32xf32>
    %134 = vector.extract_strided_slice %130 {offsets = [0, 96], sizes = [1, 32], strides = [1, 1]} : vector<1x128xf32> to vector<1x32xf32>
    %135 = arith.mulf %131, %115 : vector<1x32xf32>
    %136 = arith.mulf %132, %134 : vector<1x32xf32>
    %137 = arith.addf %135, %136 : vector<1x32xf32>
    %138 = math.tanh %137 : vector<1x32xf32>
    %139 = arith.mulf %133, %138 : vector<1x32xf32>
    %c5 = arith.constant 5 : index
    %c0_34 = arith.constant 0 : index
    %140 = vector.load %arg11[%c5, %c0_34] : memref<8x32xf32, #tpu.memory_space<vmem>>, vector<1x32xf32>
    tpu.vector_store %arg11[%c5, %c0_34], %139 {strides = array<i32>} : memref<8x32xf32, #tpu.memory_space<vmem>>, vector<1x32xf32>,
    %141 = vector.extract_strided_slice %0 {offsets = [6, 0], sizes = [1, 32], strides = [1, 1]} : vector<8x32xf32> to vector<1x32xf32>
    %cst_35 = arith.constant dense<0.000000e+00> : vector<1x128xf32>
    %142 = tpu.matmul %141, %1, %cst_35 {dimension_numbers = #tpu.dot_dimension_numbers<[1], [0], [0], [1], [0, 0, 1, 1], [], []>} : vector<1x32xf32>, vector<32x128xf32>, vector<1x128xf32> -> vector<1x128xf32>
    %cst_36 = arith.constant dense<0.000000e+00> : vector<1x128xf32>
    %143 = tpu.matmul %139, %2, %cst_36 {dimension_numbers = #tpu.dot_dimension_numbers<[1], [0], [0], [1], [0, 0, 1, 1], [], []>} : vector<1x32xf32>, vector<32x128xf32>, vector<1x128xf32> -> vector<1x128xf32>
    %144 = arith.addf %142, %143 : vector<1x128xf32>
    %145 = arith.addf %144, %3 : vector<1x128xf32>
    %146 = arith.negf %145 : vector<1x128xf32>
    %147 = math.exp %146 : vector<1x128xf32>
    %cst_37 = arith.constant 1.000000e+00 : f32
    %148 = vector.broadcast %cst_37 : f32 to vector<1x128xf32>
    %149 = arith.addf %148, %147 : vector<1x128xf32>
    %150 = arith.divf %148, %149 : vector<1x128xf32>
    %151 = math.tanh %145 : vector<1x128xf32>
    %152 = arith.select %6, %150, %151 : vector<1x128xi1>, vector<1x128xf32>
    %153 = vector.extract_strided_slice %152 {offsets = [0, 0], sizes = [1, 32], strides = [1, 1]} : vector<1x128xf32> to vector<1x32xf32>
    %154 = vector.extract_strided_slice %152 {offsets = [0, 32], sizes = [1, 32], strides = [1, 1]} : vector<1x128xf32> to vector<1x32xf32>
    %155 = vector.extract_strided_slice %152 {offsets = [0, 64], sizes = [1, 32], strides = [1, 1]} : vector<1x128xf32> to vector<1x32xf32>
    %156 = vector.extract_strided_slice %152 {offsets = [0, 96], sizes = [1, 32], strides = [1, 1]} : vector<1x128xf32> to vector<1x32xf32>
    %157 = arith.mulf %153, %137 : vector<1x32xf32>
    %158 = arith.mulf %154, %156 : vector<1x32xf32>
    %159 = arith.addf %157, %158 : vector<1x32xf32>
    %160 = math.tanh %159 : vector<1x32xf32>
    %161 = arith.mulf %155, %160 : vector<1x32xf32>
    %c6 = arith.constant 6 : index
    %c0_38 = arith.constant 0 : index
    %162 = vector.load %arg11[%c6, %c0_38] : memref<8x32xf32, #tpu.memory_space<vmem>>, vector<1x32xf32>
    tpu.vector_store %arg11[%c6, %c0_38], %161 {strides = array<i32>} : memref<8x32xf32, #tpu.memory_space<vmem>>, vector<1x32xf32>,
    %163 = vector.extract_strided_slice %0 {offsets = [7, 0], sizes = [1, 32], strides = [1, 1]} : vector<8x32xf32> to vector<1x32xf32>
    %cst_39 = arith.constant dense<0.000000e+00> : vector<1x128xf32>
    %164 = tpu.matmul %163, %1, %cst_39 {dimension_numbers = #tpu.dot_dimension_numbers<[1], [0], [0], [1], [0, 0, 1, 1], [], []>} : vector<1x32xf32>, vector<32x128xf32>, vector<1x128xf32> -> vector<1x128xf32>
    %cst_40 = arith.constant dense<0.000000e+00> : vector<1x128xf32>
    %165 = tpu.matmul %161, %2, %cst_40 {dimension_numbers = #tpu.dot_dimension_numbers<[1], [0], [0], [1], [0, 0, 1, 1], [], []>} : vector<1x32xf32>, vector<32x128xf32>, vector<1x128xf32> -> vector<1x128xf32>
    %166 = arith.addf %164, %165 : vector<1x128xf32>
    %167 = arith.addf %166, %3 : vector<1x128xf32>
    %168 = arith.negf %167 : vector<1x128xf32>
    %169 = math.exp %168 : vector<1x128xf32>
    %cst_41 = arith.constant 1.000000e+00 : f32
    %170 = vector.broadcast %cst_41 : f32 to vector<1x128xf32>
    %171 = arith.addf %170, %169 : vector<1x128xf32>
    %172 = arith.divf %170, %171 : vector<1x128xf32>
    %173 = math.tanh %167 : vector<1x128xf32>
    %174 = arith.select %6, %172, %173 : vector<1x128xi1>, vector<1x128xf32>
    %175 = vector.extract_strided_slice %174 {offsets = [0, 0], sizes = [1, 32], strides = [1, 1]} : vector<1x128xf32> to vector<1x32xf32>
    %176 = vector.extract_strided_slice %174 {offsets = [0, 32], sizes = [1, 32], strides = [1, 1]} : vector<1x128xf32> to vector<1x32xf32>
    %177 = vector.extract_strided_slice %174 {offsets = [0, 64], sizes = [1, 32], strides = [1, 1]} : vector<1x128xf32> to vector<1x32xf32>
    %178 = vector.extract_strided_slice %174 {offsets = [0, 96], sizes = [1, 32], strides = [1, 1]} : vector<1x128xf32> to vector<1x32xf32>
    %179 = arith.mulf %175, %159 : vector<1x32xf32>
    %180 = arith.mulf %176, %178 : vector<1x32xf32>
    %181 = arith.addf %179, %180 : vector<1x32xf32>
    %182 = math.tanh %181 : vector<1x32xf32>
    %183 = arith.mulf %177, %182 : vector<1x32xf32>
    %c7 = arith.constant 7 : index
    %c0_42 = arith.constant 0 : index
    %184 = vector.load %arg11[%c7, %c0_42] : memref<8x32xf32, #tpu.memory_space<vmem>>, vector<1x32xf32>
    tpu.vector_store %arg11[%c7, %c0_42], %183 {strides = array<i32>} : memref<8x32xf32, #tpu.memory_space<vmem>>, vector<1x32xf32>,
    %c0_43 = arith.constant 0 : index
    %c0_44 = arith.constant 0 : index
    %185 = vector.load %arg11[%c0_43, %c0_44] : memref<8x32xf32, #tpu.memory_space<vmem>>, vector<8x32xf32>
    %c0_45 = arith.constant 0 : index
    %c0_46 = arith.constant 0 : index
    %186 = vector.load %arg6[%c0_45, %c0_46] : memref<32x64xf32, #tpu.memory_space<vmem>>, vector<32x64xf32>
    %cst_47 = arith.constant dense<0.000000e+00> : vector<8x64xf32>
    %187 = tpu.matmul %185, %186, %cst_47 {dimension_numbers = #tpu.dot_dimension_numbers<[1], [0], [0], [1], [0, 0, 1, 1], [], []>} : vector<8x32xf32>, vector<32x64xf32>, vector<8x64xf32> -> vector<8x64xf32>
    %c0_48 = arith.constant 0 : index
    %c0_49 = arith.constant 0 : index
    %188 = vector.load %arg7[%c0_48, %c0_49] : memref<1x64xf32, #tpu.memory_space<vmem>>, vector<1x64xf32>
    %189 = vector.broadcast %188 : vector<1x64xf32> to vector<8x64xf32>
    %190 = arith.addf %187, %189 : vector<8x64xf32>
    %c0_50 = arith.constant 0 : index
    %c0_51 = arith.constant 0 : index
    %191 = vector.load %arg8[%c0_50, %c0_51] : memref<8x64xf32, #tpu.memory_space<vmem>>, vector<8x64xf32>
    tpu.vector_store %arg8[%c0_50, %c0_51], %190 {strides = array<i32>} : memref<8x64xf32, #tpu.memory_space<vmem>>, vector<8x64xf32>,
    %c0_52 = arith.constant 0 : index
    %c0_53 = arith.constant 0 : index
    %192 = vector.load %arg9[%c0_52, %c0_53] : memref<1x32xf32, #tpu.memory_space<vmem>>, vector<1x32xf32>
    tpu.vector_store %arg9[%c0_52, %c0_53], %183 {strides = array<i32>} : memref<1x32xf32, #tpu.memory_space<vmem>>, vector<1x32xf32>,
    %c0_54 = arith.constant 0 : index
    %c0_55 = arith.constant 0 : index
    %193 = vector.load %arg10[%c0_54, %c0_55] : memref<1x32xf32, #tpu.memory_space<vmem>>, vector<1x32xf32>
    tpu.vector_store %arg10[%c0_54, %c0_55], %181 {strides = array<i32>} : memref<1x32xf32, #tpu.memory_space<vmem>>, vector<1x32xf32>,
    return
  }
}

</mosaic_0001>

<bundles_post_ra>
// kernel: char_lstm_forward.1
= control target key start
LH: loop header
LB: loop body
LE: loop exit
PB: predicated region body
PF: predicated region fallthrough
CT: control target
= control target key end

     0   :  { %16 = vsyncpa [#allocation4], 0  ;;  %v2023_v2 = vmov 0.0   ;;  %s2425_s0 = inlined_call_operand.vmem [shape: f32[8,32], index: 0, kind: input, shape index: {}]   ;;  %s2426_s1 = inlined_call_operand.vmem [shape: f32[1,32], index: 1, kind: input, shape index: {}, may-alias: {1,2}]   ;;  %s2427_s2 = inlined_call_operand.vmem [shape: f32[1,32], index: 2, kind: input, shape index: {}, may-alias: {1,2}]   ;;  %s2428_s3 = inlined_call_operand.vmem [shape: f32[32,128], index: 3, kind: input, shape index: {}]   ;;  %s2429_s4 = inlined_call_operand.vmem [shape: f32[32,128], index: 4, kind: input, shape index: {}]   ;;  %s2430_s5 = inlined_call_operand.vmem [shape: f32[1,128], index: 5, kind: input, shape index: {}]   ;;  %s2431_s6 = inlined_call_operand.vmem [shape: f32[32,64], index: 6, kind: input, shape index: {}]   ;;  %s2432_s7 = inlined_call_operand.vmem [shape: f32[1,64], index: 7, kind: input, shape index: {}]   ;;  %s2433_s8 = inlined_call_operand.hbm [shape: f32[8,64], index: 8, kind: output, shape index: {0}]   ;;  %s2434_s9 = inlined_call_operand.hbm [shape: f32[1,32], index: 9, kind: output, shape index: {1}]   ;;  %s2435_s10 = inlined_call_operand.hbm [shape: f32[1,32], index: 10, kind: output, shape index: {2}]  }
   0x1   :  { %v2088_v0 = vld [vmem:[%s2429_s4 + $0x18] sm:$0xff]  ;;  %1701 = vmatprep.subr.mxu0 %v2023_v2  ;;  %1712 = vmatprep.subr.mxu1 %v2023_v2  ;;  %v2100_v3 = vld [vmem:[%s2429_s4 + $0x10] sm:$0xff]  ;;  %v2114_v5 = vld [vmem:[%s2429_s4 + $0x8] sm:$0xff] }
   0x2   :  { %v2093_v1 = vld [vmem:[%s2428_s3 + $0x18] sm:$0xff]  ;;  %v2105_v4 = vld [vmem:[%s2428_s3 + $0x10] sm:$0xff]  ;;  %1702 = vmatpush3.msra.mxu0 %v2088_v0  ;;  %v2119_v6 = vld [vmem:[%s2428_s3 + $0x8] sm:$0xff] }
   0x3   :  { %1713 = vmatpush3.msra.mxu1 %v2093_v1  ;;  %1703 = vmatprep.subr.mxu0 %v2023_v2 }
   0x4   :  { %1714 = vmatprep.subr.mxu1 %v2023_v2 }
   0x5   :  { %17 = vsyncpa [#allocation6], 0  ;;  %1704 = vmatpush3.msra.mxu0 %v2100_v3  ;;  %1715 = vmatpush3.msra.mxu1 %v2105_v4  ;;  %v2128_v7 = vld [vmem:[%s2429_s4] sm:$0xff]  ;;  %vm49_vm0 = vcmask 261120   ;;  %vm2024_vm1 = vmmov 0   ;;  %v44_v21 = vlaneseq  ;;  %vm226_vm3 = vcmask 253952  }
   0x6   :  { %1705 = vmatprep.subr.mxu0 %v2023_v2  ;;  %1716 = vmatprep.subr.mxu1 %v2023_v2  ;;  %v2135_v8 = vld [vmem:[%s2428_s3] sm:$0xff]  ;;  %s2025_s3 = smov 64   ;;  %s2027_s21 = smov [#allocation5]  }
   0x7   :  { %1706 = vmatpush3.msra.mxu0 %v2114_v5  ;;  %1717 = vmatpush3.msra.mxu1 %v2119_v6  ;;  %v47_v9 = vld [vmem:[%s2426_s1] sm:$0x1]  ;;  %v2184_v22 = vand.u32 127, %v44_v21  ;;  %s1565_s22 = sshll.u32 %s2027_s21, 4  ;;  %s1566_s22 = int_to_ptr.vmem [resolvable:$true] %s1565_s22 }
   0x8   :  { %1707 = vmatprep.subr.mxu0 %v2023_v2  ;;  %1718 = vmatprep.subr.mxu1 %v2023_v2  ;;  %v2145_v10 = vld [vmem:[%s2425_s0] sm:$0xff]  ;;  %s1963_s23 = scalar_lea.vmem %s1566_s22, 32  ;;  %p1964_p1 = scmp.lt.s32.totalorder %s1566_s22, %s1566_s22 }
   0x9   :  { %1708 = vmatpush3.msra.mxu0 %v2128_v7  ;;  %1709 = vmatprep.mubr.msk.f32.mxu0 %vm2024_vm1, %v2023_v2  ;;  %v2181_v12 = vld [vmem:[%s2430_s5] sm:$0x1]  ;;  %vm46_vm2 = vcmp.lt.s32.totalorder %v2184_v22, 96  ;;  %s2026_s5 = smov 96   ;;  %v300_v32 = vrot.slane %v2145_v10, 1  ;;  %v476_v54 = vrot.slane %v2145_v10, 2 }
   0xa   :  { %1719 = vmatpush3.msra.mxu1 %v2135_v8  ;;  %1720 = vmatprep.mubr.msk.f32.mxu1 %vm2024_vm1, %v2023_v2  ;;  %v48_v28 = vld [vmem:[%s2427_s2] sm:$0x1]  ;;  %v1464_v22 = vld [vmem:[%s2431_s6 + $0x18] sm:$0xff] }
   0xb   :  { %1710 = vmatmul.mubr.msk.f32.vlgmr.msra.gmra.mxu0 %vm49_vm0, %v47_v9  ;;  %1721 = vmatmul.mubr.msk.f32.vlgmr.msra.gmra.mxu1 %vm49_vm0, %v2145_v10 }
   0xc   :  { %1734 = vmatprep.subr.mxu1 %v2023_v2  ;;  %1723 = vmatprep.subr.mxu0 %v2023_v2 }
   0xd   :  { %1735 = vmatpush3.msra.mxu1 %v2093_v1  ;;  %1724 = vmatpush3.msra.mxu0 %v2088_v0 }
   0xe   :  { %1736 = vmatprep.subr.mxu1 %v2023_v2  ;;  %1725 = vmatprep.subr.mxu0 %v2023_v2 }
   0xf   :  { %1737 = vmatpush3.msra.mxu1 %v2105_v4  ;;  %1726 = vmatpush3.msra.mxu0 %v2100_v3 }
  0x10   :  { %1738 = vmatprep.subr.mxu1 %v2023_v2  ;;  %1727 = vmatprep.subr.mxu0 %v2023_v2 }
  0x11   :  { %1739 = vmatpush3.msra.mxu1 %v2119_v6  ;;  %1728 = vmatpush3.msra.mxu0 %v2114_v5 }
  0x12   :  { %1740 = vmatprep.subr.mxu1 %v2023_v2  ;;  %1742 = vmatprep.mubr.msk.f32.mxu1 %vm2024_vm1, %v2023_v2 }
  0x13   :  { %1741 = vmatpush3.msra.mxu1 %v2135_v8  ;;  %1729 = vmatprep.subr.mxu0 %v2023_v2 }
  0x14   :  { %1730 = vmatpush3.msra.mxu0 %v2128_v7  ;;  %1731 = vmatprep.mubr.msk.f32.mxu0 %vm2024_vm1, %v2023_v2 }
  0x15   :  { %1756 = vmatprep.subr.mxu1 %v2023_v2  ;;  %1745 = vmatprep.subr.mxu0 %v2023_v2 }
  0x16   :  { %1743 = vmatmul.mubr.msk.f32.vlgmr.msra.gmra.mxu1 %vm49_vm0, %v300_v32 }
  0x17   :  { %1757 = vmatpush3.msra.mxu1 %v2093_v1  ;;  %1764 = vmatprep.mubr.msk.f32.mxu1 %vm2024_vm1, %v2023_v2 }
  0x18   :  { %1758 = vmatprep.subr.mxu1 %v2023_v2 }
  0x19   :  { %1759 = vmatpush3.msra.mxu1 %v2105_v4 }
  0x1a   :  { %1760 = vmatprep.subr.mxu1 %v2023_v2 }
  0x1b   :  { %1761 = vmatpush3.msra.mxu1 %v2119_v6 }
  0x1c   :  { %1762 = vmatprep.subr.mxu1 %v2023_v2 }
  0x1d   :  { %1763 = vmatpush3.msra.mxu1 %v2135_v8 }
  0x1e   :  { %1778 = vmatprep.subr.mxu1 %v2023_v2  ;;  %1765 = vmatmul.mubr.msk.f32.vlgmr.msra.gmra.mxu1 %vm49_vm0, %v476_v54 }
  0x1f   :  { %1779 = vmatpush3.msra.mxu1 %v2093_v1  ;;  %1786 = vmatprep.mubr.msk.f32.mxu1 %vm2024_vm1, %v2023_v2 }
  0x20   :  { %1780 = vmatprep.subr.mxu1 %v2023_v2 }
  0x21   :  { %1781 = vmatpush3.msra.mxu1 %v2105_v4 }
  0x22   :  { %1782 = vmatprep.subr.mxu1 %v2023_v2 }
  0x23   :  { %1783 = vmatpush3.msra.mxu1 %v2119_v6 }
  0x24   :  { %1784 = vmatprep.subr.mxu1 %v2023_v2 }
  0x25   :  { %1785 = vmatpush3.msra.mxu1 %v2135_v8 }
  0x26   :  { %1800 = vmatprep.subr.mxu1 %v2023_v2 }
  0xcb   :  { %v119_v11 = vpop.f32.mrf.mxu0  ;;  %v192_v13 = vpop.f32.mrf.mxu1 }
  0xcc   :  { %v193_v14 = vadd.f32 %v192_v13, %v119_v11 }
  0xcd   :  { %v1711_v15 = vpop.f32.mrf.mxu0  ;;  %v1722_v16 = vpop.f32.mrf.mxu1 }
  0xce   :  { %v196_v17 = vadd.f32 %v193_v14, %v2181_v12 }
  0xd0   :  { %v1592_v18 = vmul.f32 -1.442695, %v196_v17 }
  0xd2   :  { %1895 = vpow2.f32 %v1592_v18 }
  0xd3   :  { %1897 = vtanh.f32 %v196_v17 }
  0xd6   :  { %v369_v36 = vpop.f32.mrf.mxu1 }
  0xd8   :  { %v1744_v37 = vpop.f32.mrf.mxu1 }
  0xde   :  { %v545_v58 = vpop.f32.mrf.mxu1 }
  0xdf   :  { %v1896_v19 = vpop.eup %1895 }
  0xe0   :  { %v200_v20 = vadd.f32 1.0, %v1896_v19  ;;  %v1898_v23 = vpop.eup %1897  ;;  %v1766_v59 = vpop.f32.mrf.mxu1 }
  0xe2   :  { %1899 = vrcp.f32 %v200_v20 }
  0xef   :  { %v1900_v24 = vpop.eup %1899 }
  0xf0   :  { %v204_v25 = vsel %vm46_vm2, %v1900_v24, %v1898_v23  ;;  %v652_v24 = vrot.slane %v2145_v10, 3 }
  0xf1   :  { %207 = vrot.lane.b32.xlu0 %v204_v25, %s2025_s3  ;;  %v205_v29 = vmul.f32 %v204_v25, %v48_v28 }
  0xf2   :  { %1787 = vmatmul.mubr.msk.f32.vlgmr.msra.gmra.mxu1 %vm49_vm0, %v652_v24 }
  0xf3   :  { %1801 = vmatpush3.msra.mxu1 %v2093_v1  ;;  %1808 = vmatprep.mubr.msk.f32.mxu1 %vm2024_vm1, %v2023_v2 }
  0xf4   :  { %1802 = vmatprep.subr.mxu1 %v2023_v2 }
  0xf5   :  { %1803 = vmatpush3.msra.mxu1 %v2105_v4 }
  0xf6   :  { %1804 = vmatprep.subr.mxu1 %v2023_v2 }
  0xf7   :  { %1805 = vmatpush3.msra.mxu1 %v2119_v6 }
  0xf8   :  { %1806 = vmatprep.subr.mxu1 %v2023_v2 }
  0xf9   :  { %1807 = vmatpush3.msra.mxu1 %v2135_v8 }
  0xfa   :  { %1822 = vmatprep.subr.mxu1 %v2023_v2 }
 0x163   :  { %v208_v26 = vpop.permute.xlu0 %207 }
 0x164   :  { %v210_v27 = vmul.f32 %v208_v26, %v204_v25 }
 0x166   :  { %212 = vrot.lane.b32.xlu0 %v210_v27, %s2026_s5 }
 0x1b2   :  { %v721_v28 = vpop.f32.mrf.mxu1 }
 0x1d8   :  { %v213_v30 = vpop.permute.xlu0 %212 }
 0x1d9   :  { %v215_v31 = vadd.f32 %v213_v30, %v205_v29  ;;  %v1788_v29 = vpop.f32.mrf.mxu1 }
 0x1db   :  { %1901 = vtanh.f32 %v215_v31 }
 0x1e8   :  { %v1902_v33 = vpop.eup %1901 }
 0x1e9   :  { %218 = vrot.lane.b32.xlu1 %v1902_v33, %s2025_s3 }
 0x25b   :  { %v219_v34 = vpop.permute.xlu1 %218 }
 0x25c   :  { %v221_v35 = vmul.f32 %v219_v34, %v204_v25 }
 0x25e   :  { %223 = vrot.lane.b32.xlu1 %v221_v35, %s2025_s3 }
 0x2d0   :  { %v224_v38 = vpop.permute.xlu1 %223 }
 0x2d1   :  { %227 = vst.msk [vmem:[#allocation2] sm:$0x1] %vm226_vm3, %v224_v38  ;;  %1732 = vmatmul.mubr.msk.f32.vlgmr.msra.gmra.mxu0 %vm49_vm0, %v224_v38 }
 0x2d2   :  { %1746 = vmatpush3.msra.mxu0 %v2088_v0  ;;  %1753 = vmatprep.mubr.msk.f32.mxu0 %vm2024_vm1, %v2023_v2 }
 0x2d3   :  { %1747 = vmatprep.subr.mxu0 %v2023_v2 }
 0x2d4   :  { %1748 = vmatpush3.msra.mxu0 %v2100_v3 }
 0x2d5   :  { %1749 = vmatprep.subr.mxu0 %v2023_v2 }
 0x2d6   :  { %1750 = vmatpush3.msra.mxu0 %v2114_v5 }
 0x2d7   :  { %1751 = vmatprep.subr.mxu0 %v2023_v2 }
 0x2d8   :  { %1752 = vmatpush3.msra.mxu0 %v2128_v7 }
 0x2d9   :  { %1767 = vmatprep.subr.mxu0 %v2023_v2 }
 0x391   :  { %v296_v39 = vpop.f32.mrf.mxu0 }
 0x392   :  { %v370_v40 = vadd.f32 %v369_v36, %v296_v39 }
 0x393   :  { %v1733_v41 = vpop.f32.mrf.mxu0 }
 0x394   :  { %v373_v42 = vadd.f32 %v370_v40, %v2181_v12 }
 0x396   :  { %v1595_v43 = vmul.f32 -1.442695, %v373_v42 }
 0x398   :  { %1903 = vpow2.f32 %v1595_v43 }
 0x399   :  { %1905 = vtanh.f32 %v373_v42 }
 0x3a5   :  { %v1904_v44 = vpop.eup %1903 }
 0x3a6   :  { %v377_v45 = vadd.f32 1.0, %v1904_v44  ;;  %v1906_v46 = vpop.eup %1905 }
 0x3a8   :  { %1907 = vrcp.f32 %v377_v45 }
 0x3b5   :  { %v1908_v47 = vpop.eup %1907 }
 0x3b6   :  { %v381_v48 = vsel %vm46_vm2, %v1908_v47, %v1906_v46  ;;  %v828_v46 = vrot.slane %v2145_v10, 4 }
 0x3b7   :  { %384 = vrot.lane.b32.xlu0 %v381_v48, %s2025_s3  ;;  %v382_v51 = vmul.f32 %v381_v48, %v215_v31 }
 0x3b8   :  { %1809 = vmatmul.mubr.msk.f32.vlgmr.msra.gmra.mxu1 %vm49_vm0, %v828_v46 }
 0x3b9   :  { %1823 = vmatpush3.msra.mxu1 %v2093_v1  ;;  %1830 = vmatprep.mubr.msk.f32.mxu1 %vm2024_vm1, %v2023_v2 }
 0x3ba   :  { %1824 = vmatprep.subr.mxu1 %v2023_v2 }
 0x3bb   :  { %1825 = vmatpush3.msra.mxu1 %v2105_v4 }
 0x3bc   :  { %1826 = vmatprep.subr.mxu1 %v2023_v2 }
 0x3bd   :  { %1827 = vmatpush3.msra.mxu1 %v2119_v6 }
 0x3be   :  { %1828 = vmatprep.subr.mxu1 %v2023_v2 }
 0x3bf   :  { %1829 = vmatpush3.msra.mxu1 %v2135_v8 }
 0x3c0   :  { %1844 = vmatprep.subr.mxu1 %v2023_v2 }
 0x429   :  { %v385_v49 = vpop.permute.xlu0 %384 }
 0x42a   :  { %v387_v50 = vmul.f32 %v385_v49, %v381_v48 }
 0x42c   :  { %389 = vrot.lane.b32.xlu1 %v387_v50, %s2026_s5 }
 0x478   :  { %v897_v50 = vpop.f32.mrf.mxu1 }
 0x49e   :  { %v390_v52 = vpop.permute.xlu1 %389 }
 0x49f   :  { %v392_v53 = vadd.f32 %v390_v52, %v382_v51  ;;  %v1810_v51 = vpop.f32.mrf.mxu1 }
 0x4a1   :  { %1909 = vtanh.f32 %v392_v53 }
 0x4ae   :  { %v1910_v55 = vpop.eup %1909 }
 0x4af   :  { %395 = vrot.lane.b32.xlu0 %v1910_v55, %s2025_s3 }
 0x521   :  { %v396_v56 = vpop.permute.xlu0 %395 }
 0x522   :  { %v398_v57 = vmul.f32 %v396_v56, %v381_v48 }
 0x524   :  { %400 = vrot.lane.b32.xlu1 %v398_v57, %s2025_s3 }
 0x596   :  { %v401_v60 = vpop.permute.xlu1 %400 }
 0x597   :  { %403 = vst.msk [vmem:[#allocation2 + $0x1] sm:$0x1] %vm226_vm3, %v401_v60  ;;  %1754 = vmatmul.mubr.msk.f32.vlgmr.msra.gmra.mxu0 %vm49_vm0, %v401_v60 }
 0x598   :  { %1768 = vmatpush3.msra.mxu0 %v2088_v0  ;;  %1775 = vmatprep.mubr.msk.f32.mxu0 %vm2024_vm1, %v2023_v2 }
 0x599   :  { %1769 = vmatprep.subr.mxu0 %v2023_v2 }
 0x59a   :  { %1770 = vmatpush3.msra.mxu0 %v2100_v3 }
 0x59b   :  { %1771 = vmatprep.subr.mxu0 %v2023_v2 }
 0x59c   :  { %1772 = vmatpush3.msra.mxu0 %v2114_v5 }
 0x59d   :  { %1773 = vmatprep.subr.mxu0 %v2023_v2 }
 0x59e   :  { %1774 = vmatpush3.msra.mxu0 %v2128_v7 }
 0x59f   :  { %1789 = vmatprep.subr.mxu0 %v2023_v2 }
 0x657   :  { %v472_v61 = vpop.f32.mrf.mxu0 }
 0x658   :  { %v546_v62 = vadd.f32 %v545_v58, %v472_v61 }
 0x659   :  { %v1755_v63 = vpop.f32.mrf.mxu0 }
 0x65a   :  { %v549_v9 = vadd.f32 %v546_v62, %v2181_v12 }
 0x65c   :  { %v1598_v11 = vmul.f32 -1.442695, %v549_v9 }
 0x65e   :  { %1911 = vpow2.f32 %v1598_v11 }
 0x65f   :  { %1913 = vtanh.f32 %v549_v9 }
 0x66b   :  { %v1912_v13 = vpop.eup %1911 }
 0x66c   :  { %v553_v14 = vadd.f32 1.0, %v1912_v13  ;;  %v1914_v15 = vpop.eup %1913 }
 0x66e   :  { %1915 = vrcp.f32 %v553_v14 }
 0x67b   :  { %v1916_v16 = vpop.eup %1915 }
 0x67c   :  { %v557_v17 = vsel %vm46_vm2, %v1916_v16, %v1914_v15  ;;  %v1004_v15 = vrot.slane %v2145_v10, 5 }
 0x67d   :  { %560 = vrot.lane.b32.xlu0 %v557_v17, %s2025_s3  ;;  %v558_v20 = vmul.f32 %v557_v17, %v392_v53 }
 0x67e   :  { %1831 = vmatmul.mubr.msk.f32.vlgmr.msra.gmra.mxu1 %vm49_vm0, %v1004_v15 }
 0x67f   :  { %1845 = vmatpush3.msra.mxu1 %v2093_v1  ;;  %1852 = vmatprep.mubr.msk.f32.mxu1 %vm2024_vm1, %v2023_v2 }
 0x680   :  { %1846 = vmatprep.subr.mxu1 %v2023_v2 }
 0x681   :  { %1847 = vmatpush3.msra.mxu1 %v2105_v4 }
 0x682   :  { %1848 = vmatprep.subr.mxu1 %v2023_v2 }
 0x683   :  { %1849 = vmatpush3.msra.mxu1 %v2119_v6 }
 0x684   :  { %1850 = vmatprep.subr.mxu1 %v2023_v2 }
 0x685   :  { %1851 = vmatpush3.msra.mxu1 %v2135_v8 }
 0x686   :  { %1866 = vmatprep.subr.mxu1 %v2023_v2 }
 0x6ef   :  { %v561_v18 = vpop.permute.xlu0 %560 }
 0x6f0   :  { %v563_v19 = vmul.f32 %v561_v18, %v557_v17 }
 0x6f2   :  { %565 = vrot.lane.b32.xlu1 %v563_v19, %s2026_s5 }
 0x73e   :  { %v1073_v19 = vpop.f32.mrf.mxu1 }
 0x764   :  { %v566_v21 = vpop.permute.xlu1 %565 }
 0x765   :  { %v568_v23 = vadd.f32 %v566_v21, %v558_v20  ;;  %v1832_v20 = vpop.f32.mrf.mxu1 }
 0x766   :  { %v1463_v20 = vld [vmem:[%s2431_s6 + $0x10] sm:$0xff] }
 0x767   :  { %1917 = vtanh.f32 %v568_v23 }
 0x774   :  { %v1918_v25 = vpop.eup %1917 }
 0x775   :  { %571 = vrot.lane.b32.xlu0 %v1918_v25, %s2025_s3 }
 0x7e7   :  { %v572_v26 = vpop.permute.xlu0 %571 }
 0x7e8   :  { %v574_v27 = vmul.f32 %v572_v26, %v557_v17 }
 0x7ea   :  { %576 = vrot.lane.b32.xlu1 %v574_v27, %s2025_s3 }
 0x85c   :  { %v577_v30 = vpop.permute.xlu1 %576 }
 0x85d   :  { %579 = vst.msk [vmem:[#allocation2 + $0x2] sm:$0x1] %vm226_vm3, %v577_v30  ;;  %1776 = vmatmul.mubr.msk.f32.vlgmr.msra.gmra.mxu0 %vm49_vm0, %v577_v30 }
 0x85e   :  { %1790 = vmatpush3.msra.mxu0 %v2088_v0  ;;  %1797 = vmatprep.mubr.msk.f32.mxu0 %vm2024_vm1, %v2023_v2 }
 0x85f   :  { %1791 = vmatprep.subr.mxu0 %v2023_v2 }
 0x860   :  { %1792 = vmatpush3.msra.mxu0 %v2100_v3 }
 0x861   :  { %1793 = vmatprep.subr.mxu0 %v2023_v2 }
 0x862   :  { %1794 = vmatpush3.msra.mxu0 %v2114_v5 }
 0x863   :  { %1795 = vmatprep.subr.mxu0 %v2023_v2 }
 0x864   :  { %1796 = vmatpush3.msra.mxu0 %v2128_v7 }
 0x865   :  { %1811 = vmatprep.subr.mxu0 %v2023_v2 }
 0x91d   :  { %v648_v31 = vpop.f32.mrf.mxu0 }
 0x91e   :  { %v722_v32 = vadd.f32 %v721_v28, %v648_v31 }
 0x91f   :  { %v1777_v33 = vpop.f32.mrf.mxu0 }
 0x920   :  { %v725_v34 = vadd.f32 %v722_v32, %v2181_v12 }
 0x922   :  { %v1601_v35 = vmul.f32 -1.442695, %v725_v34 }
 0x924   :  { %1919 = vpow2.f32 %v1601_v35 }
 0x925   :  { %1921 = vtanh.f32 %v725_v34 }
 0x931   :  { %v1920_v36 = vpop.eup %1919 }
 0x932   :  { %v729_v37 = vadd.f32 1.0, %v1920_v36  ;;  %v1922_v38 = vpop.eup %1921 }
 0x934   :  { %1923 = vrcp.f32 %v729_v37 }
 0x941   :  { %v1924_v39 = vpop.eup %1923 }
 0x942   :  { %v733_v40 = vsel %vm46_vm2, %v1924_v39, %v1922_v38  ;;  %v1180_v38 = vrot.slane %v2145_v10, 6 }
 0x943   :  { %736 = vrot.lane.b32.xlu0 %v733_v40, %s2025_s3  ;;  %v734_v43 = vmul.f32 %v733_v40, %v568_v23 }
 0x944   :  { %1853 = vmatmul.mubr.msk.f32.vlgmr.msra.gmra.mxu1 %vm49_vm0, %v1180_v38 }
 0x945   :  { %1867 = vmatpush3.msra.mxu1 %v2093_v1  ;;  %1874 = vmatprep.mubr.msk.f32.mxu1 %vm2024_vm1, %v2023_v2 }
 0x946   :  { %1868 = vmatprep.subr.mxu1 %v2023_v2 }
 0x947   :  { %1869 = vmatpush3.msra.mxu1 %v2105_v4 }
 0x948   :  { %1870 = vmatprep.subr.mxu1 %v2023_v2 }
 0x949   :  { %1871 = vmatpush3.msra.mxu1 %v2119_v6 }
 0x94a   :  { %1872 = vmatprep.subr.mxu1 %v2023_v2 }
 0x94b   :  { %1873 = vmatpush3.msra.mxu1 %v2135_v8 }
 0x9b5   :  { %v737_v41 = vpop.permute.xlu0 %736 }
 0x9b6   :  { %v739_v42 = vmul.f32 %v737_v41, %v733_v40 }
 0x9b8   :  { %741 = vrot.lane.b32.xlu1 %v739_v42, %s2026_s5 }
 0xa04   :  { %v1249_v41 = vpop.f32.mrf.mxu1 }
 0xa06   :  { %v1854_v42 = vpop.f32.mrf.mxu1 }
 0xa2a   :  { %v742_v44 = vpop.permute.xlu1 %741 }
 0xa2b   :  { %v744_v45 = vadd.f32 %v742_v44, %v734_v43 }
 0xa2d   :  { %1925 = vtanh.f32 %v744_v45 }
 0xa3a   :  { %v1926_v47 = vpop.eup %1925 }
 0xa3b   :  { %747 = vrot.lane.b32.xlu0 %v1926_v47, %s2025_s3 }
 0xaad   :  { %v748_v48 = vpop.permute.xlu0 %747 }
 0xaae   :  { %v750_v49 = vmul.f32 %v748_v48, %v733_v40 }
 0xab0   :  { %752 = vrot.lane.b32.xlu1 %v750_v49, %s2025_s3 }
 0xb22   :  { %v753_v52 = vpop.permute.xlu1 %752 }
 0xb23   :  { %755 = vst.msk [vmem:[#allocation2 + $0x3] sm:$0x1] %vm226_vm3, %v753_v52  ;;  %1798 = vmatmul.mubr.msk.f32.vlgmr.msra.gmra.mxu0 %vm49_vm0, %v753_v52  ;;  %v1356_v52 = vrot.slane %v2145_v10, 7 }
 0xb24   :  { %1812 = vmatpush3.msra.mxu0 %v2088_v0  ;;  %1819 = vmatprep.mubr.msk.f32.mxu0 %vm2024_vm1, %v2023_v2 }
 0xb25   :  { %1813 = vmatprep.subr.mxu0 %v2023_v2  ;;  %1875 = vmatmul.mubr.msk.f32.vlgmr.msra.gmra.mxu1 %vm49_vm0, %v1356_v52 }
 0xb26   :  { %1814 = vmatpush3.msra.mxu0 %v2100_v3 }
 0xb27   :  { %1815 = vmatprep.subr.mxu0 %v2023_v2 }
 0xb28   :  { %1816 = vmatpush3.msra.mxu0 %v2114_v5 }
 0xb29   :  { %1817 = vmatprep.subr.mxu0 %v2023_v2 }
 0xb2a   :  { %1818 = vmatpush3.msra.mxu0 %v2128_v7 }
 0xb2b   :  { %1833 = vmatprep.subr.mxu0 %v2023_v2 }
 0xbe3   :  { %v824_v53 = vpop.f32.mrf.mxu0 }
 0xbe4   :  { %v898_v54 = vadd.f32 %v897_v50, %v824_v53 }
 0xbe5   :  { %v1799_v55 = vpop.f32.mrf.mxu0 }
 0xbe6   :  { %v901_v56 = vadd.f32 %v898_v54, %v2181_v12 }
 0xbe8   :  { %v1604_v57 = vmul.f32 -1.442695, %v901_v56 }
 0xbea   :  { %1927 = vpow2.f32 %v1604_v57 }
 0xbeb   :  { %1929 = vtanh.f32 %v901_v56  ;;  %v1425_v56 = vpop.f32.mrf.mxu1 }
 0xbed   :  { %v1876_v57 = vpop.f32.mrf.mxu1 }
 0xbf7   :  { %v1928_v58 = vpop.eup %1927 }
 0xbf8   :  { %v905_v59 = vadd.f32 1.0, %v1928_v58  ;;  %v1930_v60 = vpop.eup %1929 }
 0xbfa   :  { %1931 = vrcp.f32 %v905_v59 }
 0xc07   :  { %v1932_v61 = vpop.eup %1931 }
 0xc08   :  { %v909_v62 = vsel %vm46_vm2, %v1932_v61, %v1930_v60 }
 0xc09   :  { %912 = vrot.lane.b32.xlu0 %v909_v62, %s2025_s3  ;;  %v910_v11 = vmul.f32 %v909_v62, %v744_v45 }
 0xc7b   :  { %v913_v63 = vpop.permute.xlu0 %912 }
 0xc7c   :  { %v915_v9 = vmul.f32 %v913_v63, %v909_v62 }
 0xc7e   :  { %917 = vrot.lane.b32.xlu1 %v915_v9, %s2026_s5 }
 0xcf0   :  { %v918_v13 = vpop.permute.xlu1 %917 }
 0xcf1   :  { %v920_v14 = vadd.f32 %v918_v13, %v910_v11 }
 0xcf3   :  { %1933 = vtanh.f32 %v920_v14 }
 0xd00   :  { %v1934_v16 = vpop.eup %1933 }
 0xd01   :  { %923 = vrot.lane.b32.xlu0 %v1934_v16, %s2025_s3 }
 0xd73   :  { %v924_v17 = vpop.permute.xlu0 %923 }
 0xd74   :  { %v926_v18 = vmul.f32 %v924_v17, %v909_v62 }
 0xd76   :  { %928 = vrot.lane.b32.xlu1 %v926_v18, %s2025_s3 }
 0xde8   :  { %v929_v21 = vpop.permute.xlu1 %928 }
 0xde9   :  { %931 = vst.msk [vmem:[#allocation2 + $0x4] sm:$0x1] %vm226_vm3, %v929_v21  ;;  %1820 = vmatmul.mubr.msk.f32.vlgmr.msra.gmra.mxu0 %vm49_vm0, %v929_v21  ;;  %v1462_v21 = vld [vmem:[%s2431_s6 + $0x8] sm:$0xff] }
 0xdea   :  { %1834 = vmatpush3.msra.mxu0 %v2088_v0  ;;  %1841 = vmatprep.mubr.msk.f32.mxu0 %vm2024_vm1, %v2023_v2 }
 0xdeb   :  { %1835 = vmatprep.subr.mxu0 %v2023_v2 }
 0xdec   :  { %1836 = vmatpush3.msra.mxu0 %v2100_v3 }
 0xded   :  { %1837 = vmatprep.subr.mxu0 %v2023_v2 }
 0xdee   :  { %1838 = vmatpush3.msra.mxu0 %v2114_v5 }
 0xdef   :  { %1839 = vmatprep.subr.mxu0 %v2023_v2 }
 0xdf0   :  { %1840 = vmatpush3.msra.mxu0 %v2128_v7 }
 0xdf1   :  { %1855 = vmatprep.subr.mxu0 %v2023_v2 }
 0xea9   :  { %v1000_v23 = vpop.f32.mrf.mxu0 }
 0xeaa   :  { %v1074_v24 = vadd.f32 %v1073_v19, %v1000_v23  ;;  %v1461_v23 = vld [vmem:[%s2431_s6] sm:$0xff]  ;;  %s1959_s6 = scalar_lea.vmem %s1566_s22, 16 }
 0xeab   :  { %v1821_v25 = vpop.f32.mrf.mxu0  ;;  %p1960_p0 = scmp.ne.s32.totalorder %s1566_s22, %s1959_s6  ;;  %p1965_p2 = scmp.lt.s32.totalorder %s1963_s23, %s1959_s6 }
 0xeac   :  { %v1077_v26 = vadd.f32 %v1074_v24, %v2181_v12 }
 0xead   :  { %p1966_p3 = por %p1965_p2, %p1964_p1 }
 0xeae   :  { %v1607_v27 = vmul.f32 -1.442695, %v1077_v26 }
 0xeaf   :  { %p1967_p4 = pnand %p1966_p3, %p1960_p0 }
 0xeb0   :  { %1935 = vpow2.f32 %v1607_v27 }
 0xeb1   :  { %1937 = vtanh.f32 %v1077_v26 }
 0xebd   :  { %v1936_v28 = vpop.eup %1935 }
 0xebe   :  { %v1081_v29 = vadd.f32 1.0, %v1936_v28  ;;  %v1938_v30 = vpop.eup %1937 }
 0xec0   :  { %1939 = vrcp.f32 %v1081_v29 }
 0xecd   :  { %v1940_v31 = vpop.eup %1939 }
 0xece   :  { %v1085_v32 = vsel %vm46_vm2, %v1940_v31, %v1938_v30 }
 0xecf   :  { %1088 = vrot.lane.b32.xlu0 %v1085_v32, %s2025_s3  ;;  %v1086_v35 = vmul.f32 %v1085_v32, %v920_v14 }
 0xf41   :  { %v1089_v33 = vpop.permute.xlu0 %1088 }
 0xf42   :  { %v1091_v34 = vmul.f32 %v1089_v33, %v1085_v32 }
 0xf44   :  { %1093 = vrot.lane.b32.xlu1 %v1091_v34, %s2026_s5 }
 0xfb6   :  { %v1094_v36 = vpop.permute.xlu1 %1093 }
 0xfb7   :  { %v1096_v37 = vadd.f32 %v1094_v36, %v1086_v35 }
 0xfb9   :  { %1941 = vtanh.f32 %v1096_v37 }
 0xfc6   :  { %v1942_v39 = vpop.eup %1941 }
 0xfc7   :  { %1099 = vrot.lane.b32.xlu0 %v1942_v39, %s2025_s3 }
0x1039   :  { %v1100_v40 = vpop.permute.xlu0 %1099 }
0x103a   :  { %v1102_v1 = vmul.f32 %v1100_v40, %v1085_v32 }
0x103c   :  { %1104 = vrot.lane.b32.xlu1 %v1102_v1, %s2025_s3 }
0x10ae   :  { %v1105_v43 = vpop.permute.xlu1 %1104 }
0x10af   :  { %1107 = vst.msk [vmem:[#allocation2 + $0x5] sm:$0x1] %vm226_vm3, %v1105_v43  ;;  %1842 = vmatmul.mubr.msk.f32.vlgmr.msra.gmra.mxu0 %vm49_vm0, %v1105_v43 }
0x10b0   :  { %1856 = vmatpush3.msra.mxu0 %v2088_v0  ;;  %1863 = vmatprep.mubr.msk.f32.mxu0 %vm2024_vm1, %v2023_v2 }
0x10b1   :  { %1857 = vmatprep.subr.mxu0 %v2023_v2 }
0x10b2   :  { %1858 = vmatpush3.msra.mxu0 %v2100_v3 }
0x10b3   :  { %1859 = vmatprep.subr.mxu0 %v2023_v2 }
0x10b4   :  { %1860 = vmatpush3.msra.mxu0 %v2114_v5 }
0x10b5   :  { %1861 = vmatprep.subr.mxu0 %v2023_v2 }
0x10b6   :  { %1862 = vmatpush3.msra.mxu0 %v2128_v7 }
0x10b7   :  { %1877 = vmatprep.subr.mxu0 %v2023_v2 }
0x116f   :  { %v1176_v4 = vpop.f32.mrf.mxu0 }
0x1170   :  { %v1250_v6 = vadd.f32 %v1249_v41, %v1176_v4 }
0x1171   :  { %v1843_v0 = vpop.f32.mrf.mxu0 }
0x1172   :  { %v1253_v8 = vadd.f32 %v1250_v6, %v2181_v12 }
0x1174   :  { %v1610_v44 = vmul.f32 -1.442695, %v1253_v8 }
0x1176   :  { %1943 = vpow2.f32 %v1610_v44 }
0x1177   :  { %1945 = vtanh.f32 %v1253_v8 }
0x1183   :  { %v1944_v45 = vpop.eup %1943 }
0x1184   :  { %v1257_v46 = vadd.f32 1.0, %v1944_v45  ;;  %v1946_v3 = vpop.eup %1945 }
0x1186   :  { %1947 = vrcp.f32 %v1257_v46 }
0x1193   :  { %v1948_v47 = vpop.eup %1947 }
0x1194   :  { %v1261_v5 = vsel %vm46_vm2, %v1948_v47, %v1946_v3 }
0x1195   :  { %1264 = vrot.lane.b32.xlu0 %v1261_v5, %s2025_s3  ;;  %v1262_v49 = vmul.f32 %v1261_v5, %v1096_v37 }
0x1207   :  { %v1265_v7 = vpop.permute.xlu0 %1264 }
0x1208   :  { %v1267_v48 = vmul.f32 %v1265_v7, %v1261_v5 }
0x120a   :  { %1269 = vrot.lane.b32.xlu1 %v1267_v48, %s2026_s5 }
0x127c   :  { %v1270_v50 = vpop.permute.xlu1 %1269 }
0x127d   :  { %v1272_v51 = vadd.f32 %v1270_v50, %v1262_v49 }
0x127f   :  { %1949 = vtanh.f32 %v1272_v51 }
0x128c   :  { %v1950_v53 = vpop.eup %1949 }
0x128d   :  { %1275 = vrot.lane.b32.xlu0 %v1950_v53, %s2025_s3 }
0x12ff   :  { %v1276_v54 = vpop.permute.xlu0 %1275 }
0x1300   :  { %v1278_v55 = vmul.f32 %v1276_v54, %v1261_v5 }
0x1302   :  { %1280 = vrot.lane.b32.xlu1 %v1278_v55, %s2025_s3 }
0x1374   :  { %v1281_v58 = vpop.permute.xlu1 %1280 }
0x1375   :  { %1283 = vst.msk [vmem:[#allocation2 + $0x6] sm:$0x1] %vm226_vm3, %v1281_v58  ;;  %1864 = vmatmul.mubr.msk.f32.vlgmr.msra.gmra.mxu0 %vm49_vm0, %v1281_v58 }
0x1376   :  { %1885 = vmatprep.mubr.msk.f32.mxu0 %vm2024_vm1, %v2023_v2  ;;  %1878 = vmatpush3.msra.mxu0 %v1464_v22 }
0x1377   :  { %1879 = vmatprep.subr.mxu0 %v2023_v2 }
0x1378   :  { %1880 = vmatpush3.msra.mxu0 %v1463_v20 }
0x1379   :  { %1881 = vmatprep.subr.mxu0 %v2023_v2 }
0x137a   :  { %1882 = vmatpush3.msra.mxu0 %v1462_v21 }
0x137b   :  { %1883 = vmatprep.subr.mxu0 %v2023_v2 }
0x137c   :  { %1884 = vmatpush3.msra.mxu0 %v1461_v23 }
0x1435   :  { %v1352_v10 = vpop.f32.mrf.mxu0 }
0x1436   :  { %v1426_v59 = vadd.f32 %v1425_v56, %v1352_v10 }
0x1437   :  { %v1865_v60 = vpop.f32.mrf.mxu0 }
0x1438   :  { %v1429_v61 = vadd.f32 %v1426_v59, %v2181_v12 }
0x143a   :  { %v1613_v62 = vmul.f32 -1.442695, %v1429_v61 }
0x143c   :  { %1951 = vpow2.f32 %v1613_v62 }
0x143d   :  { %1953 = vtanh.f32 %v1429_v61 }
0x1449   :  { %v1952_v63 = vpop.eup %1951 }
0x144a   :  { %v1433_v9 = vadd.f32 1.0, %v1952_v63  ;;  %v1954_v11 = vpop.eup %1953 }
0x144c   :  { %1955 = vrcp.f32 %v1433_v9 }
0x1459   :  { %v1956_v13 = vpop.eup %1955 }
0x145a   :  { %v1437_v14 = vsel %vm46_vm2, %v1956_v13, %v1954_v11 }
0x145b   :  { %1440 = vrot.lane.b32.xlu0 %v1437_v14, %s2025_s3  ;;  %v1438_v17 = vmul.f32 %v1437_v14, %v1272_v51 }
0x14cd   :  { %v1441_v15 = vpop.permute.xlu0 %1440 }
0x14ce   :  { %v1443_v16 = vmul.f32 %v1441_v15, %v1437_v14 }
0x14d0   :  { %1445 = vrot.lane.b32.xlu1 %v1443_v16, %s2026_s5 }
0x1542   :  { %v1446_v18 = vpop.permute.xlu1 %1445 }
0x1543   :  { %v1448_v12 = vadd.f32 %v1446_v18, %v1438_v17 }
0x1545   :  { %1957 = vtanh.f32 %v1448_v12  ;;  %1548 = vst.msk [vmem:[#allocation7] sm:$0x1] %vm226_vm3, %v1448_v12 }
0x1552   :  { %v1958_v19 = vpop.eup %1957 }
0x1553   :  { %1451 = vrot.lane.b32.xlu0 %v1958_v19, %s2025_s3 }
0x15c5   :  { %v1452_v24 = vpop.permute.xlu0 %1451 }
0x15c6   :  { %v1454_v25 = vmul.f32 %v1452_v24, %v1437_v14 }
0x15c8   :  { %1456 = vrot.lane.b32.xlu1 %v1454_v25, %s2025_s3 }
0x163a   :  { %v1457_v26 = vpop.permute.xlu1 %1456 }
0x163b   :  { %1459 = vst.msk [vmem:[#allocation2 + $0x7] sm:$0x1] %vm226_vm3, %v1457_v26  ;;  %1547 = vst.msk [vmem:[#allocation5] sm:$0x1] %vm226_vm3, %v1457_v26 }
0x1642   :  { %v1460_v27 = vld [vmem:[#allocation2] sm:$0xff] }
0x1643   :  { %1886 = vmatmul.mubr.msk.f32.vlgmr.msra.gmra.mxu0 %vm49_vm0, %v1460_v27 }
0x1644   :  { %1970 = shalt.err (!%p1967_p4)
}
0x1645   :  { %1568 = dma.vmem_to_hbm [thread:$0]  %s1566_s22, 16, %s2434_s9, [#allocation6]  }
0x1646   :  { %s2028_s26 = smov [#allocation7]  }
0x1647   :  { %s1575_s27 = sshll.u32 %s2028_s26, 4  ;;  %s1576_s27 = int_to_ptr.vmem [resolvable:$true] %s1575_s27 }
0x1648   :  { %s1979_s28 = scalar_lea.vmem %s1576_s27, 16  ;;  %s1983_s29 = scalar_lea.vmem %s1576_s27, 32 }
0x1649   :  { %p1980_p5 = scmp.ne.s32.totalorder %s1576_s27, %s1979_s28  ;;  %p1984_p6 = scmp.lt.s32.totalorder %s1576_s27, %s1576_s27 }
0x164a   :  { %p1985_p7 = scmp.lt.s32.totalorder %s1983_s29, %s1979_s28 }
0x164c   :  { %p1986_p8 = por %p1985_p7, %p1984_p6 }
0x164e   :  { %p1987_p9 = pnand %p1986_p8, %p1980_p5 }
0x1650   :  { %1990 = shalt.err (!%p1987_p9)
}
0x1651   :  { %1578 = dma.vmem_to_hbm [thread:$0]  %s1576_s27, 16, %s2435_s10, [#allocation6]   ;;  %v1614_v2 = vld [vmem:[%s2432_s7] ss:$0 sm:$0xff]  ;;  %vm1545_vm4 = vcmask 523264  }
0x1652   :  { %s2029_s9 = smov [#allocation3]  }
0x1653   :  { %s1555_s1 = sshll.u32 %s2029_s9, 4  ;;  %s1556_s1 = int_to_ptr.vmem [resolvable:$true] %s1555_s1 }
0x1654   :  { %s1999_s3 = scalar_lea.vmem %s1556_s1, 128  ;;  %p2004_p11 = scmp.lt.s32.totalorder %s1556_s1, %s1556_s1 }
0x1655   :  { %p2000_p10 = scmp.ne.s32.totalorder %s1556_s1, %s1999_s3  ;;  %p2005_p12 = scmp.lt.s32.totalorder %s1999_s3, %s1999_s3 }
0x1657   :  { %p2006_p13 = por %p2005_p12, %p2004_p11 }
0x1659   :  { %p2007_p0 = pnand %p2006_p13, %p2000_p10 }
0x1703   :  { %v1541_v28 = vpop.f32.mrf.mxu0 }
0x1704   :  { %v1542_v29 = vadd.f32 %v1614_v2, %v1541_v28 }
0x1705   :  { %v1887_v30 = vpop.f32.mrf.mxu0 }
0x1706   :  { %1546 = vst.msk [vmem:[#allocation3] sm:$0xff] %vm1545_vm4, %v1542_v29 }
0x1707   :  { %2010 = shalt.err (!%p2007_p0)
}
0x1708   :  { %1558 = dma.vmem_to_hbm [thread:$0]  %s1556_s1, 128, %s2433_s8, [#allocation4]  }
0x1709   :  { %2019 = dma.done.wait [#allocation4], 128  }
0x170a   :  { %2020 = vsyncadd [#allocation4], 4294967168 }
0x170b   :  { %2021 = dma.done.wait [#allocation6], 32  }
0x170c   :  { %2022 = vsyncadd [#allocation6], 4294967264 }
0x170d   :  { %1588 = vsyncpa [#allocation4], 1 }
0x170e   :  { %1589 = vsyncpa [#allocation6], 1 }

</bundles_post_ra>
